<compile_context>
chip_gen: v6e
topology: v6e:2x2x1
jax: 0.10.0
libtpu: 0.0.40
codegen_flags: <defaults>
</compile_context>

<pallas_src>
from functools import partial

import jax
import jax.numpy as jnp
from jax import lax
from jax.experimental import pallas as pl
from jax.experimental.pallas import tpu as pltpu


def _per_example_focal(x, t, col0, *, alpha, gamma, n_valid, c, tn):
    """Per-example focal loss for one batch tile.

    x:    (C, TN) float32 logits (batch on the lane axis)
    t:    (1, TN) int32 class targets
    col0: scalar, global column offset of this tile (for padding mask)
    returns (1, TN) float32 focal loss, 0 for padded columns.
    """
    cls = lax.broadcasted_iota(jnp.int32, (c, tn), 0)           # class id per row
    m = jnp.max(x, axis=0, keepdims=True)                       # (1, TN)
    lse = jnp.log(jnp.sum(jnp.exp(x - m), axis=0, keepdims=True)) + m
    x_t = jnp.sum(jnp.where(cls == t, x, 0.0), axis=0, keepdims=True)
    ce = lse - x_t                                              # cross-entropy, 'none'
    pt = jnp.exp(-ce)                                           # prob of target class
    focal = alpha * (1.0 - pt) ** gamma * ce
    col = lax.broadcasted_iota(jnp.int32, (1, tn), 1) + col0
    return jnp.where(col < n_valid, focal, 0.0)


def _focal_reduce_kernel(x_ref, t_ref, o_ref, acc_ref,
                         *, alpha, gamma, n_valid, c, tn, scale):
    """Fused focal loss with in-kernel reduction ('mean' / 'sum')."""
    i = pl.program_id(0)

    @pl.when(i == 0)
    def _():
        acc_ref[...] = jnp.zeros_like(acc_ref)

    focal = _per_example_focal(x_ref[...], t_ref[...], i * tn,
                               alpha=alpha, gamma=gamma, n_valid=n_valid, c=c, tn=tn)
    acc_ref[...] += jnp.sum(focal, keepdims=True)               # (1, 1)

    @pl.when(i == pl.num_programs(0) - 1)
    def _():
        o_ref[...] = acc_ref[...] * scale                       # scale = 1/N or 1


def _focal_none_kernel(x_ref, t_ref, o_ref, *, alpha, gamma, n_valid, c, tn):
    """Per-example focal loss (reduction='none'), lane-dense output."""
    i = pl.program_id(0)
    o_ref[...] = _per_example_focal(x_ref[...], t_ref[...], i * tn,
                                    alpha=alpha, gamma=gamma,
                                    n_valid=n_valid, c=c, tn=tn)


def focal_loss(logits, targets, alpha=1.0, gamma=2, reduction="mean", block_n=128):
    """FocalLoss.forward(inputs, targets) — inputs (N, C) logits, targets (N,) ints."""
    n, c = logits.shape
    assert block_n % 128 == 0, "batch tile must be a multiple of the 128-wide lane axis"
    tn = block_n
    n_pad = ((n + tn - 1) // tn) * tn

    # Layout plumbing only: batch -> lanes (lane-dense), pad batch to tile multiple.
    xt = jnp.transpose(logits.astype(jnp.float32))              # (C, N)
    t2 = targets.astype(jnp.int32).reshape(1, n)                # (1, N)
    if n_pad != n:
        xt = jnp.pad(xt, ((0, 0), (0, n_pad - n)))
        t2 = jnp.pad(t2, ((0, 0), (0, n_pad - n)))

    grid = (n_pad // tn,)
    in_specs = [
        pl.BlockSpec((c, tn), lambda i: (0, i)),
        pl.BlockSpec((1, tn), lambda i: (0, i)),
    ]
    common = dict(alpha=float(alpha), gamma=gamma, n_valid=n, c=c, tn=tn)

    if reduction in ("mean", "sum"):
        scale = (1.0 / n) if reduction == "mean" else 1.0
        out = pl.pallas_call(
            partial(_focal_reduce_kernel, scale=scale, **common),
            out_shape=jax.ShapeDtypeStruct((1, 1), jnp.float32),
            grid=grid,
            in_specs=in_specs,
            out_specs=pl.BlockSpec((1, 1), lambda i: (0, 0)),   # resident accumulator
            scratch_shapes=[pltpu.VMEM((1, 1), jnp.float32)],
            compiler_params=pltpu.CompilerParams(
                dimension_semantics=("arbitrary",)),
        )(xt, t2)
        return out[0, 0]

    if reduction == "none":
        out = pl.pallas_call(
            partial(_focal_none_kernel, **common),
            out_shape=jax.ShapeDtypeStruct((1, n_pad), jnp.float32),
            grid=grid,
            in_specs=in_specs,
            out_specs=pl.BlockSpec((1, tn), lambda i: (0, i)),
            compiler_params=pltpu.CompilerParams(
                dimension_semantics=("parallel",)),
        )(xt, t2)
        return out[0, :n]

    raise ValueError(f"unsupported reduction: {reduction!r}")


def reference_focal_loss(logits, targets, alpha=1.0, gamma=2, reduction="mean"):
    """Pure-JAX reference mirroring the PyTorch FocalLoss.forward."""
    lse = jax.nn.logsumexp(logits, axis=-1)
    x_t = jnp.take_along_axis(logits, targets[:, None], axis=-1)[:, 0]
    ce = lse - x_t
    pt = jnp.exp(-ce)
    fl = alpha * (1.0 - pt) ** gamma * ce
    if reduction == "mean":
        return fl.mean()
    if reduction == "sum":
        return fl.sum()
    return fl


if __name__ == "__main__":
    # CIFAR-10-style shapes: batch=200 (not a multiple of the 128-lane tile, to
    # exercise padding + multi-step accumulation), num_classes=10.
    N, C = 200, 10
    key = jax.random.PRNGKey(0)
    k1, k2 = jax.random.split(key)
    logits = 2.0 * jax.random.normal(k1, (N, C), dtype=jnp.float32)
    targets = jax.random.randint(k2, (N,), 0, C)

    out_mean = jax.block_until_ready(focal_loss(logits, targets, reduction="mean"))
    out_sum = jax.block_until_ready(focal_loss(logits, targets, reduction="sum"))
    out_none = jax.block_until_ready(focal_loss(logits, targets, reduction="none"))

    ref_mean = reference_focal_loss(logits, targets, reduction="mean")
    ref_sum = reference_focal_loss(logits, targets, reduction="sum")
    ref_none = reference_focal_loss(logits, targets, reduction="none")

    assert out_none.shape == (N,)
    assert jnp.allclose(out_mean, ref_mean, atol=1e-5, rtol=1e-5), (
        f"mean: {out_mean} vs {ref_mean}")
    assert jnp.allclose(out_sum, ref_sum, atol=1e-4, rtol=1e-5), (
        f"sum: {out_sum} vs {ref_sum}")
    assert jnp.allclose(out_none, ref_none, atol=1e-5, rtol=1e-5), (
        f"none: max abs err {jnp.max(jnp.abs(out_none - ref_none))}")

    print("KERNEL_OK")
</pallas_src>

<mosaic_0001>
module attributes {stable_mosaic.version = 11 : i64} {
  func.func @_focal_reduce_kernel(%arg0: i32, %arg1: memref<10x128xf32, #tpu.memory_space<vmem>>, %arg2: memref<1x128xi32, #tpu.memory_space<vmem>>, %arg3: memref<1x1xf32, #tpu.memory_space<vmem>>, %arg4: memref<1x1xf32, #tpu.memory_space<vmem>>) attributes {dimension_semantics = [#tpu.dimension_semantics<arbitrary>], iteration_bounds = array<i64: 2>, scalar_prefetch = 0 : i64, scratch_operands = 1 : i64, tpu.core_type = #tpu.core_type<tc>, window_params = [{transform_indices = @transform_0, window_bounds = array<i64: 10, 128>}, {transform_indices = @transform_1, window_bounds = array<i64: 1, 128>}, {pipeline_mode = #tpu.pipeline_mode<synchronous>, transform_indices = @transform_2, window_bounds = array<i64: 1, 1>}]} {
    %c0_i32 = arith.constant 0 : i32
    %0 = arith.cmpi eq, %arg0, %c0_i32 : i32
    %1 = arith.extui %0 : i1 to i32
    %c0_i32_0 = arith.constant 0 : i32
    %2 = arith.cmpi ne, %1, %c0_i32_0 : i32
    scf.if %2 {
      %cst_17 = arith.constant 0.000000e+00 : f32
      %50 = vector.broadcast %cst_17 : f32 to vector<1x1xf32>
      %c0_18 = arith.constant 0 : index
      %c0_19 = arith.constant 0 : index
      %51 = vector.load %arg4[%c0_18, %c0_19] : memref<1x1xf32, #tpu.memory_space<vmem>>, vector<1x1xf32>
      tpu.vector_store %arg4[%c0_18, %c0_19], %50 {strides = array<i32>} : memref<1x1xf32, #tpu.memory_space<vmem>>, vector<1x1xf32>,
    } else {
    }
    %c0 = arith.constant 0 : index
    %c0_1 = arith.constant 0 : index
    %3 = vector.load %arg1[%c0, %c0_1] : memref<10x128xf32, #tpu.memory_space<vmem>>, vector<10x128xf32>
    %c0_2 = arith.constant 0 : index
    %c0_3 = arith.constant 0 : index
    %4 = vector.load %arg2[%c0_2, %c0_3] : memref<1x128xi32, #tpu.memory_space<vmem>>, vector<1x128xi32>
    %c128_i32 = arith.constant 128 : i32
    %5 = arith.muli %arg0, %c128_i32 : i32
    %6 = tpu.iota {dimensions = array<i32: 0>} : vector<10x128xi32>
    %cst = arith.constant dense<0xFF800000> : vector<128xf32>
    %7 = vector.multi_reduction <maximumf>, %3, %cst [0] : vector<10x128xf32> to vector<128xf32>
    %8 = vector.shape_cast %7 : vector<128xf32> to vector<1x128xf32>
    %9 = vector.broadcast %8 : vector<1x128xf32> to vector<10x128xf32>
    %10 = arith.subf %3, %9 : vector<10x128xf32>
    %11 = math.exp %10 : vector<10x128xf32>
    %cst_4 = arith.constant dense<0.000000e+00> : vector<128xf32>
    %12 = vector.multi_reduction <add>, %11, %cst_4 [0] : vector<10x128xf32> to vector<128xf32>
    %13 = vector.shape_cast %12 : vector<128xf32> to vector<1x128xf32>
    %14 = math.log %13 : vector<1x128xf32>
    %15 = arith.addf %14, %8 : vector<1x128xf32>
    %16 = vector.broadcast %4 : vector<1x128xi32> to vector<10x128xi32>
    %17 = arith.cmpi eq, %6, %16 : vector<10x128xi32>
    %cst_5 = arith.constant 0.000000e+00 : f32
    %18 = vector.broadcast %cst_5 : f32 to vector<10x128xf32>
    %19 = arith.select %17, %3, %18 : vector<10x128xi1>, vector<10x128xf32>
    %cst_6 = arith.constant dense<0.000000e+00> : vector<128xf32>
    %20 = vector.multi_reduction <add>, %19, %cst_6 [0] : vector<10x128xf32> to vector<128xf32>
    %21 = vector.shape_cast %20 : vector<128xf32> to vector<1x128xf32>
    %22 = arith.subf %15, %21 : vector<1x128xf32>
    %cst_7 = arith.constant 0.000000e+00 : f32
    %23 = vector.broadcast %cst_7 : f32 to vector<1x128xf32>
    %24 = arith.subf %23, %22 : vector<1x128xf32>
    %25 = math.exp %24 : vector<1x128xf32>
    %cst_8 = arith.constant 1.000000e+00 : f32
    %26 = vector.broadcast %cst_8 : f32 to vector<1x128xf32>
    %27 = arith.subf %26, %25 : vector<1x128xf32>
    %28 = arith.mulf %27, %27 : vector<1x128xf32>
    %cst_9 = arith.constant 1.000000e+00 : f32
    %29 = vector.broadcast %cst_9 : f32 to vector<1x128xf32>
    %30 = arith.mulf %29, %28 : vector<1x128xf32>
    %31 = arith.mulf %30, %22 : vector<1x128xf32>
    %32 = tpu.iota {dimensions = array<i32: 1>} : vector<1x128xi32>
    %33 = vector.broadcast %5 : i32 to vector<1x128xi32>
    %34 = arith.addi %32, %33 : vector<1x128xi32>
    %c200_i32 = arith.constant 200 : i32
    %35 = vector.broadcast %c200_i32 : i32 to vector<1x128xi32>
    %36 = arith.cmpi slt, %34, %35 : vector<1x128xi32>
    %cst_10 = arith.constant 0.000000e+00 : f32
    %37 = vector.broadcast %cst_10 : f32 to vector<1x128xf32>
    %38 = arith.select %36, %31, %37 : vector<1x128xi1>, vector<1x128xf32>
    %c0_11 = arith.constant 0 : index
    %c0_12 = arith.constant 0 : index
    %39 = vector.load %arg4[%c0_11, %c0_12] : memref<1x1xf32, #tpu.memory_space<vmem>>, vector<1x1xf32>
    %40 = vector.shape_cast %38 : vector<1x128xf32> to vector<1x1x128xf32>
    %cst_13 = arith.constant dense<0.000000e+00> : vector<1xf32>
    %41 = vector.multi_reduction <add>, %40, %cst_13 [1, 2] : vector<1x1x128xf32> to vector<1xf32>
    %42 = vector.shape_cast %41 : vector<1xf32> to vector<1x1x1xf32>
    %43 = vector.extract %42[0, 0, 0] : f32 from vector<1x1x1xf32>
    %44 = vector.broadcast %43 : f32 to vector<1x1xf32>
    %45 = arith.addf %39, %44 : vector<1x1xf32>
    %c0_14 = arith.constant 0 : index
    %c0_15 = arith.constant 0 : index
    %46 = vector.load %arg4[%c0_14, %c0_15] : memref<1x1xf32, #tpu.memory_space<vmem>>, vector<1x1xf32>
    tpu.vector_store %arg4[%c0_14, %c0_15], %45 {strides = array<i32>} : memref<1x1xf32, #tpu.memory_space<vmem>>, vector<1x1xf32>,
    %c1_i32 = arith.constant 1 : i32
    %47 = arith.cmpi eq, %arg0, %c1_i32 : i32
    %48 = arith.extui %47 : i1 to i32
    %c0_i32_16 = arith.constant 0 : i32
    %49 = arith.cmpi ne, %48, %c0_i32_16 : i32
    scf.if %49 {
      %c0_17 = arith.constant 0 : index
      %c0_18 = arith.constant 0 : index
      %50 = vector.load %arg4[%c0_17, %c0_18] : memref<1x1xf32, #tpu.memory_space<vmem>>, vector<1x1xf32>
      %cst_19 = arith.constant 5.000000e-03 : f32
      %51 = vector.broadcast %cst_19 : f32 to vector<1x1xf32>
      %52 = arith.mulf %50, %51 : vector<1x1xf32>
      %c0_20 = arith.constant 0 : index
      %c0_21 = arith.constant 0 : index
      %53 = vector.load %arg3[%c0_20, %c0_21] : memref<1x1xf32, #tpu.memory_space<vmem>>, vector<1x1xf32>
      tpu.vector_store %arg3[%c0_20, %c0_21], %52 {strides = array<i32>} : memref<1x1xf32, #tpu.memory_space<vmem>>, vector<1x1xf32>,
    } else {
    }
    return
  }
  func.func @transform_0(%arg0: i32) -> (i32, i32) {
    %c0_i32 = arith.constant 0 : i32
    %c0_i32_0 = arith.constant 0 : i32
    return %c0_i32, %arg0 : i32, i32
  }
  func.func @transform_1(%arg0: i32) -> (i32, i32) {
    %c0_i32 = arith.constant 0 : i32
    %c0_i32_0 = arith.constant 0 : i32
    return %c0_i32, %arg0 : i32, i32
  }
  func.func @transform_2(%arg0: i32) -> (i32, i32) {
    %c0_i32 = arith.constant 0 : i32
    %c0_i32_0 = arith.constant 0 : i32
    %c0_i32_1 = arith.constant 0 : i32
    return %c0_i32, %c0_i32_0 : i32, i32
  }
}

</mosaic_0001>

<bundles_post_ra>
// kernel: tpu_custom_call.1
= control target key start
LH: loop header
LB: loop body
LE: loop exit
PB: predicated region body
PF: predicated region fallthrough
CT: control target
= control target key end

     0   :  { %7 = vsyncpa [#allocation4], 0  ;;  %s741_s0 = inlined_call_operand.hbm [shape: f32[10,256], index: 0, kind: input, shape index: {}]   ;;  %s742_s1 = inlined_call_operand.hbm [shape: s32[1,256], index: 1, kind: input, shape index: {}]   ;;  %s743_s2 = inlined_call_operand.hbm [shape: f32[1,1], index: 2, kind: output, shape index: {}]  }
   0x1   :  { %9 = vsyncpa [#allocation4 + $0x1], 0 }
   0x2   :  { %10 = vsyncpa [#allocation7], 0 }
   0x3   :  { %12 = vsyncpa [#allocation7 + $0x1], 0 }
   0x4   :  { %13 = vsyncpa [#allocation5], 0  ;;  %s578_s9 = smov 0   ;;  %s580_s10 = smov 0  }
   0x5   :  { %s582_s11 = smov 0   ;;  %s584_s12 = smov 0  }
   0x6 LB: > { %s597_s13 = sadd.s32 4294967295, %s554_s12   ;;  %s600_s14 = sadd.s32 1, %s554_s12   ;;  %s554_s12 = sphi %s584_s12, %s753_s12   ;;  %s550_s11 = sphi %s582_s11, %s752_s11   ;;  %s546_s10 = sphi %s580_s10, %s751_s10   ;;  %s542_s9 = sphi %s578_s9, %s750_s9  }
   0x7   : > { %s23_s15 = ssub.s32 %s554_s12, %s600_s14  ;;  %s26_s16 = sadd.s32 1, %s550_s11 }
   0x8   : > { %p24_p0 = scmp.eq.s32.totalorder %s23_s15, 0  ;;  %p33_p1 = scmp.ne.s32.totalorder %s550_s11, %s546_s10 }
   0x9   : > { %p34_p2 = scmp.eq.s32.totalorder %s554_s12, 0  ;;  %p39_p3 = scmp.ne.s32.totalorder %s546_s10, %s542_s9 }
   0xa   : > { %s610_s17 = scalar_select %p24_p0, %s550_s11, %s26_s16  }
   0xb   : > { %p35_p4 = por %p34_p2, %p33_p1  ;;  %p40_p5 = scmp.eq.s32.totalorder %s597_s13, 0 }
   0xc   : > { %p384_p6 = scmp.lt.s32.totalorder %s554_s12, 2  ;;  %s619_s19 = sand.u32 1, %s550_s11  }
   0xd   : > { %p614_p7 = por %p40_p5, %p39_p3  ;;  %s354_s20 = sshll.u32 %s619_s19, 4 }
   0xe   : > { %s355_s21 = sshll.u32 %s554_s12, 7  ;;  %s114_s25 = scalar_lea.vmem [#allocation3], %s354_s20 }
   0xf   : > { %s745_s18 = scalar_select %p614_p7, 1, 0 }
  0x10   : > { %s626_s24 = scalar_lea.hbm %s741_s0, %s355_s21  ;;  %s120_s26 = sshll.u32 %s114_s25, 4  ;;  %s628_s26 = int_to_ptr.vmem [resolvable:$true] %s120_s26 }
  0x11   : > { %p630_p8 = pnand %p384_p6, %p35_p4  ;;  %s111_s28 = scalar_lea.sflag [#allocation4], %s619_s19 }
  0x12   : > { %s432_s29 = scalar_lea.hbm %s626_s24, 256  ;;  %s437_s4 = scalar_lea.hbm %s741_s0, 512 }
  0x13   : > { %p433_p9 = scmp.ne.s32.totalorder %s626_s24, %s432_s29  ;;  %p434_p10 = pneg %p630_p8 }
  0x14   : > { %p438_p13 = scmp.lt.s32.totalorder %s626_s24, %s741_s0  ;;  %p439_p0 = scmp.lt.s32.totalorder %s437_s4, %s432_s29 }
  0x15   : > { %p435_p11 = pnand %p434_p10, %p433_p9 }
  0x16   : > { %p440_p1 = por %p439_p0, %p438_p13 }
  0x17   : > { %p436_p12 = pneg %p435_p11 }
  0x19   : > { %p441_p2 = pnand %p440_p1, %p436_p12 }
  0x1b   : > { %444 = shalt.err (!%p441_p2)
}
  0x1c   : > { %s445_s7 = scalar_lea.vmem %s628_s26, 256  ;;  %s556_s8 = smov [#allocation3]  }
  0x1d   : > { %p446_p3 = scmp.ne.s32.totalorder %s628_s26, %s445_s7  ;;  %s450_s9 = sshll.u32 %s556_s8, 4  ;;  %s451_s9 = int_to_ptr.vmem [resolvable:$false] %s450_s9 }
  0x1e   : > { %s452_s15 = scalar_lea.vmem %s451_s9, 512  ;;  %p453_p6 = scmp.lt.s32.totalorder %s628_s26, %s451_s9 }
  0x1f   : > { %p448_p4 = pnand %p446_p3, %p434_p10  ;;  %p454_p9 = scmp.lt.s32.totalorder %s452_s15, %s445_s7 }
  0x21   : > { %p449_p5 = pneg %p448_p4  ;;  %p455_p11 = por %p454_p9, %p453_p6 }
  0x23   : > { %p456_p13 = pnand %p455_p11, %p449_p5 }
  0x25   : > { %459 = shalt.err (!%p456_p13)
}
  0x26   : > { %s557_s16 = smov 256   ;;  %s558_s20 = smov 128  }
  0x27   : > { %s559_s21 = smov 8   ;;  %p357_p12 = scmp.ge.s32.totalorder %s554_s12, 1 }
  0x28   : > { %380 = dma.hbm_to_vmem [thread:$0]  (!%p630_p8), %s626_s24, 256, %s628_s26, %s111_s28, %s557_s16, %s558_s20, %s559_s21  }
  0x29   : > { %p145_p0 = scmp.lt.s32.totalorder %s554_s12, 3  ;;  %s356_s23 = sshll.u32 %s554_s12, 4 }
  0x2a   : > { %s671_s30 = scalar_lea.hbm %s742_s1, %s356_s23  ;;  %s133_s3 = scalar_lea.vmem [#allocation6], %s619_s19 }
  0x2b   : > { %p663_p1 = pnand %p357_p12, %p145_p0  ;;  %s140_s4 = sshll.u32 %s133_s3, 4  ;;  %s141_s4 = int_to_ptr.vmem [resolvable:$true] %s140_s4 }
  0x2c   : > { %s131_s5 = scalar_lea.sflag [#allocation7], %s619_s19  ;;  %s460_s24 = scalar_lea.hbm %s671_s30, 16 }
  0x2d   : > { %s747_s22 = scalar_select %p663_p1, 1, 0 }
  0x2e   : > { %p461_p2 = scmp.ne.s32.totalorder %s671_s30, %s460_s24  ;;  %s465_s28 = scalar_lea.hbm %s742_s1, 32 }
  0x2f   : > { %p466_p5 = scmp.lt.s32.totalorder %s671_s30, %s742_s1  ;;  %p467_p6 = scmp.lt.s32.totalorder %s465_s28, %s460_s24 }
  0x30   : > { %p463_p3 = pnand %p461_p2, %p434_p10 }
  0x31   : > { %p468_p9 = por %p467_p6, %p466_p5 }
  0x32   : > { %p464_p4 = pneg %p463_p3 }
  0x34   : > { %p469_p11 = pnand %p468_p9, %p464_p4 }
  0x36   : > { %472 = shalt.err (!%p469_p11)
}
  0x37   : > { %s473_s8 = scalar_lea.vmem %s141_s4, 16  ;;  %s560_s19 = smov [#allocation6]  }
  0x38   : > { %p474_p13 = scmp.ne.s32.totalorder %s141_s4, %s473_s8  ;;  %s478_s9 = sshll.u32 %s560_s19, 4  ;;  %s479_s9 = int_to_ptr.vmem [resolvable:$false] %s478_s9 }
  0x39   : > { %s480_s15 = scalar_lea.vmem %s479_s9, 32  ;;  %p481_p2 = scmp.lt.s32.totalorder %s141_s4, %s479_s9 }
  0x3a   : > { %p476_p12 = pnand %p474_p13, %p434_p10  ;;  %p482_p3 = scmp.lt.s32.totalorder %s480_s15, %s473_s8 }
  0x3c   : > { %p477_p0 = pneg %p476_p12  ;;  %p483_p7 = por %p482_p3, %p481_p2 }
  0x3e   : > { %p484_p1 = pnand %p483_p7, %p477_p0 }
  0x40   : > { %487 = shalt.err (!%p484_p1)
}
  0x41   : > { %383 = dma.hbm_to_vmem [thread:$0]  (!%p630_p8), %s671_s30, 16, %s141_s4, %s131_s5  }
  0x42   : > { %p748_p4 = scmp.ne.s32.totalorder %s747_s22, 0 }
  0x43   : > { %s696_s16 = sand.u32 (!%p748_p4), 1, %s546_s10   ;;  %p749_p10 = scmp.ne.s32.totalorder (!%p748_p4), %s745_s18, 0 }
  0x44   : > { %149 = sbr.rel (%p748_p4) target bundleno = 410 (0x19a), region = 28  ;;  %s358_s20 = sshll.u32 (!%p748_p4), %s696_s16, 4 }
  0x45   : > { %s152_s21 = scalar_lea.sflag (!%p748_p4), [#allocation4], %s696_s16  ;;  %s155_s23 = scalar_lea.vmem (!%p748_p4), [#allocation3], %s358_s20 }
  0x49   : > { %529 = dma.done.wait (%p749_p10), %s152_s21, 256  }
  0x4a   : > { %531 = vsyncadd (%p749_p10), %s152_s21, 4294967040  ;;  %s161_s27 = scalar_lea.sflag [#allocation7], %s696_s16  ;;  %s163_s22 = scalar_lea.vmem [#allocation6], %s696_s16 }
  0x4b   : > { %533 = dma.done.wait (%p749_p10), %s161_s27, 16  }
  0x4c   : > { %535 = vsyncadd (%p749_p10), %s161_s27, 4294967280  ;;  %p359_p7 = scmp.ne.s32.totalorder %s597_s13, 0 }
  0x4e   : > { %186 = sbr.rel (%p359_p7) target bundleno = 85 (0x55), region = 40 }
  0x53   : > { %vm187_vm0 = vcmask 0   ;;  %v561_v0 = vmov 0.0  }
  0x54   : > { %188 = vst.msk [vmem:[#allocation2] sm:$0x1] %vm187_vm0, %v561_v0 }
  0x55 PF: > { %v189_v1 = vld [vmem:[%s155_s23] sm:$0xff]  ;;  %v190_v2 = vld [vmem:[%s155_s23 + $0x8] sm:$0x3]  ;;  %vm196_vm1 = vcmask 1041408   ;;  %v193_v15 = vlaneseq  ;;  %v361_v18 = vld [vmem:[%s163_s22] ss:$0 sm:$0xff] }
  0x56   : > { %v197_v3 = vsel %vm196_vm1, %v190_v2, -inf  ;;  %s360_s18 = sshll.u32 %s597_s13, 7  ;;  %vm252_vm5 = vcmask 1040384   ;;  %vm265_vm6 = vcmask 0   ;;  %p362_p8 = scmp.ne.s32.totalorder %s597_s13, 1 }
  0x57   : > { %v198_v4 = vmax.f32 %v189_v1, %v197_v3  ;;  %v194_v16 = vshrl.u32 %v193_v15, 7  ;;  %v246_v45 = vand.u32 127, %v193_v15  ;;  %v247_v46 = vstv %s360_s18 }
  0x59   : > { %v199_v5 = vrot.slane %v198_v4, 4  ;;  %v195_v17 = vadd.s32 8, %v194_v16  ;;  %vm226_vm3 = vcmp.eq.s32.totalorder %v194_v16, %v361_v18  ;;  %v248_v48 = vadd.s32 %v247_v46, %v246_v45 }
  0x5a   : > { %v228_v24 = vsel %vm226_vm3, %v189_v1, 0.0 }
  0x5b   : > { %v200_v6 = vmax.f32 %v198_v4, %v199_v5  ;;  %vm227_vm2 = vcmp.eq.s32.totalorder %v195_v17, %v361_v18  ;;  %vm249_vm4 = vcmp.lt.s32.totalorder %v248_v48, 200  ;;  %v251_v61 = vld [vmem:[#allocation2] sm:$0x1] }
  0x5c   : > { %v229_v21 = vsel %vm227_vm2, %v190_v2, 0.0 }
  0x5d   : > { %v201_v7 = vrot.slane %v200_v6, 2  ;;  %v230_v25 = vsel %vm196_vm1, %v229_v21, 0.0 }
  0x5e   : > { %v231_v28 = vadd.f32 %v230_v25, %v228_v24 }
  0x5f   : > { %v202_v8 = vmax.f32 %v200_v6, %v201_v7 }
  0x60   : > { %v232_v31 = vrot.slane %v231_v28, 4 }
  0x61   : > { %v203_v9 = vrot.slane %v202_v8, 1 }
  0x62   : > { %v233_v34 = vadd.f32 %v232_v31, %v231_v28 }
  0x63   : > { %v204_v10 = vmax.f32 %v202_v8, %v203_v9 }
  0x64   : > { %v234_v35 = vrot.slane %v233_v34, 2 }
  0x65   : > { %v205_v11 = vsub.f32 %v189_v1, %v204_v10  ;;  %v206_v12 = vsub.f32 %v190_v2, %v204_v10 }
  0x66   : > { %v235_v36 = vadd.f32 %v234_v35, %v233_v34 }
  0x67   : > { %v207_v13 = vmul.f32 1.442695, %v205_v11  ;;  %v209_v14 = vmul.f32 1.442695, %v206_v12 }
  0x68   : > { %v236_v37 = vrot.slane %v235_v36, 1 }
  0x69   : > { %424 = vpow2.f32 %v207_v13 }
  0x6a   : > { %426 = vpow2.f32 %v209_v14  ;;  %v237_v40 = vadd.f32 %v236_v37, %v235_v36 }
  0x76   : > { %v425_v19 = vpop.eup %424 }
  0x77   : > { %v427_v20 = vpop.eup %426 }
  0x78   : > { %v211_v22 = vsel %vm196_vm1, %v427_v20, 0.0 }
  0x79   : > { %v212_v23 = vadd.f32 %v425_v19, %v211_v22 }
  0x7b   : > { %v213_v26 = vrot.slane %v212_v23, 4 }
  0x7d   : > { %v214_v27 = vadd.f32 %v213_v26, %v212_v23 }
  0x7f   : > { %v215_v29 = vrot.slane %v214_v27, 2 }
  0x81   : > { %v216_v30 = vadd.f32 %v215_v29, %v214_v27 }
  0x83   : > { %v217_v32 = vrot.slane %v216_v30, 1 }
  0x85   : > { %v218_v33 = vadd.f32 %v217_v32, %v216_v30 }
  0x87   : > { %428 = vlog2.f32 %v218_v33 }
  0x94   : > { %v429_v38 = vpop.eup %428 }
  0x95   : > { %v220_v39 = vmul.f32 0.6931472, %v429_v38 }
  0x97   : > { %v221_v41 = vadd.f32 %v220_v39, %v204_v10 }
  0x99   : > { %v238_v42 = vsub.f32 %v221_v41, %v237_v40 }
  0x9b   : > { %v239_v43 = vsub.f32 0.0, %v238_v42 }
  0x9d   : > { %v240_v44 = vmul.f32 1.442695, %v239_v43 }
  0x9f   : > { %430 = vpow2.f32 %v240_v44 }
  0xac   : > { %v431_v47 = vpop.eup %430 }
  0xad   : > { %v242_v49 = vsub.f32 1.0, %v431_v47 }
  0xaf   : > { %v243_v50 = vmul.f32 %v242_v49, %v242_v49 }
  0xb1   : > { %v244_v51 = vmul.f32 %v243_v50, %v238_v42 }
  0xb3   : > { %v250_v52 = vsel %vm249_vm4, %v244_v51, 0.0 }
  0xb4   : > { %v253_v53 = vsel %vm252_vm5, %v250_v52, 0.0 }
  0xb5   : > { %254 = vadd.xlane.f32.xlu0 %v253_v53 }
 0x13e   : > { %v255_v54 = vpop.xlane.xlu0 %254 }
 0x13f   : > { %v256_v55 = vrot.slane %v255_v54, 4 }
 0x141   : > { %v257_v56 = vadd.f32 %v256_v55, %v255_v54 }
 0x143   : > { %v258_v57 = vrot.slane %v257_v56, 2 }
 0x145   : > { %v259_v58 = vadd.f32 %v258_v57, %v257_v56 }
 0x147   : > { %v260_v59 = vrot.slane %v259_v58, 1 }
 0x149   : > { %v261_v60 = vadd.f32 %v260_v59, %v259_v58 }
 0x14b   : > { %367 = vpush %v261_v60 }
 0x17c   : > { %s368_s25 = spop %367  ;;  %270 = sbr.rel (%p362_p8) target bundleno = 395 (0x18b), region = 44 }
 0x17d   : > { %v263_v62 = vstv %s368_s25 }
 0x17e   : > { %v264_v63 = vadd.f32 %v263_v62, %v251_v61 }
 0x180   : > { %266 = vst.msk [vmem:[#allocation2] sm:$0x1] %vm265_vm6, %v264_v63 }
 0x187   : > { %v271_v0 = vld [vmem:[#allocation2] sm:$0x1] }
 0x188   : > { %v272_v1 = vmul.f32 0.005, %v271_v0 }
 0x18a   : > { %273 = vst.msk [vmem:[#allocation8] sm:$0x1] %vm265_vm6, %v272_v1 }
 0x18b PF: > { %p385_p1 = scmp.eq.s32.totalorder %s597_s13, 1  ;;  %s562_s29 = smov [#allocation8]  }
 0x18c   : > { %s281_s30 = sshll.u32 %s562_s29, 4  ;;  %s282_s30 = int_to_ptr.vmem [resolvable:$true] %s281_s30 }
 0x18d   : > { %s488_s3 = scalar_lea.vmem %s282_s30, 16  ;;  %s494_s4 = scalar_lea.vmem %s282_s30, 32 }
 0x18e   : > { %p489_p5 = scmp.ne.s32.totalorder %s282_s30, %s488_s3  ;;  %p495_p11 = scmp.lt.s32.totalorder %s282_s30, %s282_s30 }
 0x18f   : > { %p496_p13 = scmp.lt.s32.totalorder %s494_s4, %s488_s3 }
 0x190   : > { %p490_p6 = pnand %p489_p5, %p385_p1 }
 0x191   : > { %p497_p12 = por %p496_p13, %p495_p11 }
 0x192   : > { %p491_p9 = pneg %p490_p6 }
 0x194   : > { %p498_p0 = pnand %p497_p12, %p491_p9 }
 0x196   : > { %501 = shalt.err (!%p498_p0)
}
 0x197   : > { %374 = dma.vmem_to_hbm [thread:$0]  (%p385_p1), %s282_s30, 16, %s743_s2, [#allocation5]  }
 0x198   : > { %537 = dma.done.wait (%p385_p1), [#allocation5], 16  }
 0x199   : > { %539 = vsyncadd (%p385_p1), [#allocation5], 4294967280 }
 0x19a PF: > { %p16_p2 = scmp.ge.s32.totalorder %s600_s14, 4   ;;  %s750_s9 = smov %s546_s10 }
 0x19b   : > { %s751_s10 = smov %s550_s11  ;;  %s752_s11 = smov %s610_s17 }
 0x19c   : > { %s753_s12 = smov %s600_s14  ;;  %18 = sbr.rel (!%p16_p2) target bundleno = 6 (0x6), region = 86 }
 0x1a1   :  { %294 = vsyncpa [#allocation4], 1 }
 0x1a2   :  { %296 = vsyncpa [#allocation4 + $0x1], 1 }
 0x1a3   :  { %297 = vsyncpa [#allocation7], 1 }
 0x1a4   :  { %299 = vsyncpa [#allocation7 + $0x1], 1 }
 0x1a5   :  { %300 = vsyncpa [#allocation5], 1 }
 0x1a6   :  { %302 = vsyncpa [#allocation5 + $0x1], 1 }

</bundles_post_ra>
